<compile_context>
chip_gen: v5e
topology: v5e:2x2
jax: 0.10.0
libtpu: 0.0.40
codegen_flags: <defaults>
</compile_context>

<pallas_src>
import functools

import jax
import jax.numpy as jnp
from jax.experimental import pallas as pl
from jax.experimental.pallas import tpu as pltpu

IN_FEATURES = 773
K_PAD = 896          # 7 * 128: lane-aligned contraction dim for fc1
HIDDEN = 256
TILE_B = 512         # throughput default; serving can pass a smaller tile_b


def chessnet_kernel(x_ref, w1_ref, b1_ref, w2_ref, b2_ref, w3_ref, b3_ref,
                    o_ref, xpad_ref):
    """One batch tile: (TB, 773) bf16 -> (TB, 1) f32."""
    # In-kernel K pad 773 -> 896: zero the staging buffer, then store the real
    # features at lane offset 0 (aligned start, masked tail).  The zeroed tail
    # lines up with the zero-padded rows of w1, so fc1 is exact.
    xpad_ref[...] = jnp.zeros(xpad_ref.shape, xpad_ref.dtype)
    xpad_ref[:, :IN_FEATURES] = x_ref[...]
    x = xpad_ref[...]                                                # (TB, 896) bf16

    # fc1 + ReLU (MXU, f32 accumulation)
    h1 = jnp.dot(x, w1_ref[...], preferred_element_type=jnp.float32)
    h1 = jnp.maximum(h1 + b1_ref[...], 0.0).astype(jnp.bfloat16)     # (TB, 256)

    # fc2 + ReLU
    h2 = jnp.dot(h1, w2_ref[...], preferred_element_type=jnp.float32)
    h2 = jnp.maximum(h2 + b2_ref[...], 0.0)                          # (TB, 256) f32

    # fc3 + tanh: an N=1 matmul wastes the MXU -> VPU multiply + lane reduce.
    w3 = w3_ref[...].astype(jnp.float32)                             # (1, 256)
    h3 = jnp.sum(h2 * w3, axis=-1, keepdims=True) + b3_ref[0, 0]     # (TB, 1)
    o_ref[...] = jnp.tanh(h3)


def _pick_tile(batch, max_tile):
    """Batch tile size: 8-aligned when tiling, full-batch block otherwise."""
    if batch > max_tile:
        return max_tile                                  # >= 2 tiles; last may be ragged
    if batch >= 16:
        half = pl.cdiv(batch, 2)
        return min(pl.cdiv(half, 8) * 8, batch)          # 2 tiles -> both v7x TCs busy
    return batch                                         # single block == full array dims


@functools.partial(jax.jit, static_argnames=("tile_b",))
def chessnet_forward(x, params, *, tile_b=TILE_B):
    """x: (B, 773), ideally bf16 at rest.  params: output of prepare_params."""
    w1, b1, w2, b2, w3, b3 = params
    B = x.shape[0]
    x = x.astype(jnp.bfloat16)       # no-op when the caller already stores bf16

    tb = _pick_tile(B, tile_b)
    num_tiles = pl.cdiv(B, tb)

    const = lambda a: pl.BlockSpec(a.shape, lambda i: (0,) * a.ndim)

    flops = 2 * B * (K_PAD * HIDDEN + HIDDEN * HIDDEN + HIDDEN)
    bytes_accessed = (B * IN_FEATURES * 2 + B * 4                      # x (bf16) + out (f32)
                      + (w1.size + w2.size + w3.size) * 2              # bf16 weights
                      + (b1.size + b2.size + b3.size) * 4)             # f32 biases

    out = pl.pallas_call(
        chessnet_kernel,
        out_shape=jax.ShapeDtypeStruct((B, 1), jnp.float32),
        grid=(num_tiles,),
        in_specs=[
            pl.BlockSpec((tb, IN_FEATURES), lambda i: (i, 0)),         # x: batch-tiled
            const(w1), const(b1),                                      # weights: VMEM-resident
            const(w2), const(b2),
            const(w3),
            pl.BlockSpec(memory_space=pltpu.MemorySpace.SMEM),         # b3: scalar in SMEM
        ],
        out_specs=pl.BlockSpec((tb, 1), lambda i: (i, 0)),
        scratch_shapes=[pltpu.VMEM((tb, K_PAD), jnp.bfloat16)],        # padded-x staging
        compiler_params=pltpu.CompilerParams(
            dimension_semantics=("parallel",),   # v7x: shard batch tiles across both TCs
        ),
        cost_estimate=pl.CostEstimate(
            flops=flops, transcendentals=B, bytes_accessed=bytes_accessed),
    )(x, w1, b1, w2, b2, w3, b3)

    return out


def init_params(key):
    """f32 master params mirroring nn.Linear init, stored transposed as (in, out)."""
    ks = jax.random.split(key, 6)

    def linear(kw, kb, fan_in, fan_out):
        bound = 1.0 / jnp.sqrt(fan_in)
        w = jax.random.uniform(kw, (fan_in, fan_out), jnp.float32, -bound, bound)
        b = jax.random.uniform(kb, (1, fan_out), jnp.float32, -bound, bound)
        return w, b

    w1, b1 = linear(ks[0], ks[1], IN_FEATURES, HIDDEN)
    w2, b2 = linear(ks[2], ks[3], HIDDEN, HIDDEN)
    w3, b3 = linear(ks[4], ks[5], HIDDEN, 1)
    return (w1, b1, w2, b2, w3, b3)


def prepare_params(params):
    """Device layout: bf16 weights (fc1 input dim zero-padded to K_PAD), f32 biases."""
    w1, b1, w2, b2, w3, b3 = params
    w1p = jnp.pad(w1, ((0, K_PAD - w1.shape[0]), (0, 0))).astype(jnp.bfloat16)
    return (w1p, b1,
            w2.astype(jnp.bfloat16), b2,
            w3.T.astype(jnp.bfloat16), b3)          # b3 stays (1, 1) f32 -> SMEM


def reference_forward(x, params):
    """Pure-f32 reference matching the PyTorch module semantics."""
    w1, b1, w2, b2, w3, b3 = params
    h = jnp.maximum(x @ w1 + b1, 0.0)
    h = jnp.maximum(h @ w2 + b2, 0.0)
    return jnp.tanh(h @ w3 + b3)


if __name__ == "__main__":
    key = jax.random.PRNGKey(0)
    kx, kp = jax.random.split(key)

    B = 2
    x = jax.random.normal(kx, (B, IN_FEATURES), jnp.float32)   # chess bitboard features
    params_f32 = init_params(kp)
    params_dev = prepare_params(params_f32)

    # bf16 "at rest": the single cast lives with the data producer, not the wrapper,
    # so the kernel reads x straight from HBM with no intermediate padded copy.
    x_dev = x.astype(jnp.bfloat16)

    out = chessnet_forward(x_dev, params_dev)
    out = jax.block_until_ready(out)

    ref = reference_forward(x, params_f32)
    assert out.shape == (B, 1)
    err = jnp.max(jnp.abs(out - ref))
    assert jnp.allclose(out, ref, atol=3e-2, rtol=3e-2), f"mismatch vs reference (max abs err {err})"

    print("KERNEL_OK")
</pallas_src>

<mosaic_0001>
module attributes {stable_mosaic.version = 11 : i64} {
  func.func @chessnet_kernel(%arg0: i32, %arg1: memref<2x773xbf16, #tpu.memory_space<vmem>>, %arg2: memref<896x256xbf16, #tpu.memory_space<vmem>>, %arg3: memref<1x256xf32, #tpu.memory_space<vmem>>, %arg4: memref<256x256xbf16, #tpu.memory_space<vmem>>, %arg5: memref<1x256xf32, #tpu.memory_space<vmem>>, %arg6: memref<1x256xbf16, #tpu.memory_space<vmem>>, %arg7: memref<1x1xf32, #tpu.memory_space<smem>>, %arg8: memref<2x1xf32, #tpu.memory_space<vmem>>, %arg9: memref<2x896xbf16, #tpu.memory_space<vmem>>) attributes {dimension_semantics = [#tpu.dimension_semantics<parallel>], iteration_bounds = array<i64: 1>, scalar_prefetch = 0 : i64, scratch_operands = 1 : i64, tpu.core_type = #tpu.core_type<tc>, window_params = [{transform_indices = @transform_0, window_bounds = array<i64: 2, 773>}, {pipeline_mode = #tpu.pipeline_mode<synchronous>, transform_indices = @transform_1, window_bounds = array<i64: 896, 256>}, {pipeline_mode = #tpu.pipeline_mode<synchronous>, transform_indices = @transform_2, window_bounds = array<i64: 1, 256>}, {pipeline_mode = #tpu.pipeline_mode<synchronous>, transform_indices = @transform_3, window_bounds = array<i64: 256, 256>}, {pipeline_mode = #tpu.pipeline_mode<synchronous>, transform_indices = @transform_4, window_bounds = array<i64: 1, 256>}, {pipeline_mode = #tpu.pipeline_mode<synchronous>, transform_indices = @transform_5, window_bounds = array<i64: 1, 256>}, {transform_indices = @transform_6, window_bounds = array<i64: 1, 1>}, {transform_indices = @transform_7, window_bounds = array<i64: 2, 1>}]} {
    %cst = arith.constant 0.000000e+00 : bf16
    %0 = vector.broadcast %cst : bf16 to vector<2x896xbf16>
    %c0 = arith.constant 0 : index
    %c0_0 = arith.constant 0 : index
    %1 = vector.load %arg9[%c0, %c0_0] : memref<2x896xbf16, #tpu.memory_space<vmem>>, vector<2x896xbf16>
    tpu.vector_store %arg9[%c0, %c0_0], %0 {strides = array<i32>} : memref<2x896xbf16, #tpu.memory_space<vmem>>, vector<2x896xbf16>,
    %c0_1 = arith.constant 0 : index
    %c0_2 = arith.constant 0 : index
    %2 = vector.load %arg1[%c0_1, %c0_2] : memref<2x773xbf16, #tpu.memory_space<vmem>>, vector<2x773xbf16>
    %c0_3 = arith.constant 0 : index
    %c0_4 = arith.constant 0 : index
    %3 = vector.load %arg9[%c0_3, %c0_4] : memref<2x896xbf16, #tpu.memory_space<vmem>>, vector<2x773xbf16>
    tpu.vector_store %arg9[%c0_3, %c0_4], %2 {strides = array<i32>} : memref<2x896xbf16, #tpu.memory_space<vmem>>, vector<2x773xbf16>,
    %c0_5 = arith.constant 0 : index
    %c0_6 = arith.constant 0 : index
    %4 = vector.load %arg9[%c0_5, %c0_6] : memref<2x896xbf16, #tpu.memory_space<vmem>>, vector<2x896xbf16>
    %c0_7 = arith.constant 0 : index
    %c0_8 = arith.constant 0 : index
    %5 = vector.load %arg2[%c0_7, %c0_8] : memref<896x256xbf16, #tpu.memory_space<vmem>>, vector<896x256xbf16>
    %cst_9 = arith.constant dense<0.000000e+00> : vector<2x256xf32>
    %6 = tpu.matmul %4, %5, %cst_9 {dimension_numbers = #tpu.dot_dimension_numbers<[1], [0], [0], [1], [0, 0, 1, 1], [], []>} : vector<2x896xbf16>, vector<896x256xbf16>, vector<2x256xf32> -> vector<2x256xf32>
    %c0_10 = arith.constant 0 : index
    %c0_11 = arith.constant 0 : index
    %7 = vector.load %arg3[%c0_10, %c0_11] : memref<1x256xf32, #tpu.memory_space<vmem>>, vector<1x256xf32>
    %8 = vector.broadcast %7 : vector<1x256xf32> to vector<2x256xf32>
    %9 = arith.addf %6, %8 : vector<2x256xf32>
    %cst_12 = arith.constant 0.000000e+00 : f32
    %10 = vector.broadcast %cst_12 : f32 to vector<2x256xf32>
    %11 = arith.maximumf %9, %10 : vector<2x256xf32>
    %12 = arith.truncf %11 : vector<2x256xf32> to vector<2x256xbf16>
    %c0_13 = arith.constant 0 : index
    %c0_14 = arith.constant 0 : index
    %13 = vector.load %arg4[%c0_13, %c0_14] : memref<256x256xbf16, #tpu.memory_space<vmem>>, vector<256x256xbf16>
    %cst_15 = arith.constant dense<0.000000e+00> : vector<2x256xf32>
    %14 = tpu.matmul %12, %13, %cst_15 {dimension_numbers = #tpu.dot_dimension_numbers<[1], [0], [0], [1], [0, 0, 1, 1], [], []>} : vector<2x256xbf16>, vector<256x256xbf16>, vector<2x256xf32> -> vector<2x256xf32>
    %c0_16 = arith.constant 0 : index
    %c0_17 = arith.constant 0 : index
    %15 = vector.load %arg5[%c0_16, %c0_17] : memref<1x256xf32, #tpu.memory_space<vmem>>, vector<1x256xf32>
    %16 = vector.broadcast %15 : vector<1x256xf32> to vector<2x256xf32>
    %17 = arith.addf %14, %16 : vector<2x256xf32>
    %cst_18 = arith.constant 0.000000e+00 : f32
    %18 = vector.broadcast %cst_18 : f32 to vector<2x256xf32>
    %19 = arith.maximumf %17, %18 : vector<2x256xf32>
    %c0_19 = arith.constant 0 : index
    %c0_20 = arith.constant 0 : index
    %20 = vector.load %arg6[%c0_19, %c0_20] : memref<1x256xbf16, #tpu.memory_space<vmem>>, vector<1x256xbf16>
    %21 = arith.extf %20 : vector<1x256xbf16> to vector<1x256xf32>
    %22 = vector.broadcast %21 : vector<1x256xf32> to vector<2x256xf32>
    %23 = arith.mulf %19, %22 : vector<2x256xf32>
    %cst_21 = arith.constant dense<0.000000e+00> : vector<2xf32>
    %24 = vector.multi_reduction <add>, %23, %cst_21 [1] : vector<2x256xf32> to vector<2xf32>
    %25 = vector.shape_cast %24 : vector<2xf32> to vector<2x1xf32>
    %c0_22 = arith.constant 0 : index
    %c0_23 = arith.constant 0 : index
    %26 = memref.load %arg7[%c0_22, %c0_23] : memref<1x1xf32, #tpu.memory_space<smem>>
    %27 = vector.broadcast %26 : f32 to vector<2x1xf32>
    %28 = arith.addf %25, %27 : vector<2x1xf32>
    %29 = math.tanh %28 : vector<2x1xf32>
    %c0_24 = arith.constant 0 : index
    %c0_25 = arith.constant 0 : index
    %30 = vector.load %arg8[%c0_24, %c0_25] : memref<2x1xf32, #tpu.memory_space<vmem>>, vector<2x1xf32>
    tpu.vector_store %arg8[%c0_24, %c0_25], %29 {strides = array<i32>} : memref<2x1xf32, #tpu.memory_space<vmem>>, vector<2x1xf32>,
    return
  }
  func.func @transform_0(%arg0: i32) -> (i32, i32) {
    %c0_i32 = arith.constant 0 : i32
    %c0_i32_0 = arith.constant 0 : i32
    return %arg0, %c0_i32 : i32, i32
  }
  func.func @transform_1(%arg0: i32) -> (i32, i32) {
    %c0_i32 = arith.constant 0 : i32
    %c0_i32_0 = arith.constant 0 : i32
    %c0_i32_1 = arith.constant 0 : i32
    return %c0_i32, %c0_i32_0 : i32, i32
  }
  func.func @transform_2(%arg0: i32) -> (i32, i32) {
    %c0_i32 = arith.constant 0 : i32
    %c0_i32_0 = arith.constant 0 : i32
    %c0_i32_1 = arith.constant 0 : i32
    return %c0_i32, %c0_i32_0 : i32, i32
  }
  func.func @transform_3(%arg0: i32) -> (i32, i32) {
    %c0_i32 = arith.constant 0 : i32
    %c0_i32_0 = arith.constant 0 : i32
    %c0_i32_1 = arith.constant 0 : i32
    return %c0_i32, %c0_i32_0 : i32, i32
  }
  func.func @transform_4(%arg0: i32) -> (i32, i32) {
    %c0_i32 = arith.constant 0 : i32
    %c0_i32_0 = arith.constant 0 : i32
    %c0_i32_1 = arith.constant 0 : i32
    return %c0_i32, %c0_i32_0 : i32, i32
  }
  func.func @transform_5(%arg0: i32) -> (i32, i32) {
    %c0_i32 = arith.constant 0 : i32
    %c0_i32_0 = arith.constant 0 : i32
    %c0_i32_1 = arith.constant 0 : i32
    return %c0_i32, %c0_i32_0 : i32, i32
  }
  func.func @transform_6(%arg0: i32) -> (i32, i32) {
    %c0_i32 = arith.constant 0 : i32
    %c0_i32_0 = arith.constant 0 : i32
    %c0_i32_1 = arith.constant 0 : i32
    return %c0_i32, %c0_i32_0 : i32, i32
  }
  func.func @transform_7(%arg0: i32) -> (i32, i32) {
    %c0_i32 = arith.constant 0 : i32
    %c0_i32_0 = arith.constant 0 : i32
    return %arg0, %c0_i32 : i32, i32
  }
}

</mosaic_0001>

<bundles_post_ra>
// kernel: chessnet_forward.1
= control target key start
LH: loop header
LB: loop body
LE: loop exit
PB: predicated region body
PF: predicated region fallthrough
CT: control target
= control target key end

     0   :  { %13 = vsyncpa [#allocation5], 0  ;;  %s2185_s0 = inlined_call_operand.hbm [shape: bf16[2,773], index: 0, kind: input, shape index: {}]   ;;  %s2186_s1 = inlined_call_operand.hbm [shape: bf16[896,256], index: 1, kind: input, shape index: {}]   ;;  %s2187_s2 = inlined_call_operand.vmem [shape: f32[1,256], index: 2, kind: input, shape index: {}]   ;;  %s2188_s3 = inlined_call_operand.hbm [shape: bf16[256,256], index: 3, kind: input, shape index: {}]   ;;  %s2189_s4 = inlined_call_operand.vmem [shape: f32[1,256], index: 4, kind: input, shape index: {}]   ;;  %s2190_s5 = inlined_call_operand.vmem [shape: bf16[1,256], index: 5, kind: input, shape index: {}]   ;;  %s2191_s6 = inlined_call_operand.<no memory space> [shape: f32[1,1], index: 6, kind: input, shape index: {}]   ;;  %s2192_s7 = inlined_call_operand.vmem [shape: f32[2,1], index: 7, kind: output, shape index: {}]  }
   0x1   :  { %14 = vsyncpa [#allocation7], 0  ;;  %s30_s26 = sshll.u32 %s2186_s1, 4  ;;  %s2055_s27 = smov [#allocation6]   ;;  %s31_s26 = int_to_ptr.hbm [resolvable:$true] %s30_s26 }
   0x2   :  { %s32_s28 = sshll.u32 %s2055_s27, 4  ;;  %s20_s8 = sshll.u32 %s2185_s0, 4  ;;  %s33_s28 = int_to_ptr.vmem [resolvable:$true] %s32_s28  ;;  %s21_s8 = int_to_ptr.hbm [resolvable:$true] %s20_s8 }
   0x3   :  { %s2056_s9 = smov 128   ;;  %s2057_s10 = smov 8  }
   0x4   :  { %38 = dma.hbm_to_vmem [thread:$0]  %s31_s26, 14336, %s33_s28, [#allocation7], %s2056_s9, %s2056_s9, %s2057_s10  }
   0x5   :  { %s2058_s11 = smov [#allocation4]   ;;  %s45_s15 = sshll.u32 %s2188_s3, 4  ;;  %s46_s15 = int_to_ptr.hbm [resolvable:$true] %s45_s15 }
   0x6   :  { %s22_s12 = sshll.u32 %s2058_s11, 4  ;;  %s2059_s1 = smov [#allocation8]   ;;  %s23_s12 = int_to_ptr.vmem [resolvable:$true] %s22_s12 }
   0x7   :  { %25 = dma.hbm_to_vmem [thread:$0]  %s21_s8, 112, %s23_s12, [#allocation5]  }
   0x8   :  { %s47_s16 = sshll.u32 %s2059_s1, 4  ;;  %s48_s16 = int_to_ptr.vmem [resolvable:$true] %s47_s16 }
   0x9   :  { %53 = dma.hbm_to_vmem [thread:$0]  %s46_s15, 4096, %s48_s16, [#allocation7], %s2056_s9, %s2056_s9, %s2057_s10  }
   0xa   :  { %2051 = dma.done.wait [#allocation5], 112  }
   0xb   :  { %2052 = vsyncadd [#allocation5], 4294967184 }
   0xc   :  { %2053 = dma.done.wait [#allocation7], 18432  }
   0xd   :  { %2054 = vsyncadd [#allocation7], 4294948864  ;;  %v1309_v0 = vld [vmem:[#allocation6 + $0x70] sm:$0xf]  ;;  %v1842_v1 = vld [vmem:[#allocation6 + $0x74] sm:$0xf0] }
   0xe   :  { %v1373_v2 = vld [vmem:[#allocation6 + $0xf0] sm:$0xf]  ;;  %v1310_v3 = vor.u32 %v1842_v1, %v1309_v0  ;;  %v1858_v4 = vld [vmem:[#allocation6 + $0xf4] sm:$0xf0]  ;;  %v1301_v9 = vld [vmem:[#allocation6 + $0x60] sm:$0xf] }
   0xf   :  { %v1437_v5 = vld [vmem:[#allocation6 + $0x170] sm:$0xf]  ;;  %v1874_v6 = vld [vmem:[#allocation6 + $0x174] sm:$0xf0]  ;;  %v1374_v7 = vor.u32 %v1858_v4, %v1373_v2  ;;  %v1840_v10 = vld [vmem:[#allocation6 + $0x64] sm:$0xf0] }
  0x10   :  { %v1438_v8 = vor.u32 %v1874_v6, %v1437_v5  ;;  %v1365_v11 = vld [vmem:[#allocation6 + $0xe0] sm:$0xf]  ;;  %784 = vmatpush.bf16.msra.mxu0 %v1310_v3  ;;  %v1302_v12 = vor.u32 %v1840_v10, %v1301_v9  ;;  %v1856_v13 = vld [vmem:[#allocation6 + $0xe4] sm:$0xf0]  ;;  %v1293_v18 = vld [vmem:[#allocation6 + $0x50] sm:$0xf] }
  0x11   :  { %v1429_v14 = vld [vmem:[#allocation6 + $0x160] sm:$0xf]  ;;  %v1872_v15 = vld [vmem:[#allocation6 + $0x164] sm:$0xf0]  ;;  %797 = vmatpush.bf16.msra.mxu1 %v1374_v7  ;;  %v1366_v16 = vor.u32 %v1856_v13, %v1365_v11  ;;  %v1838_v19 = vld [vmem:[#allocation6 + $0x54] sm:$0xf0] }
  0x12   :  { %810 = vmatpush.bf16.msra.mxu2 %v1438_v8  ;;  %v1430_v17 = vor.u32 %v1872_v15, %v1429_v14  ;;  %v1357_v20 = vld [vmem:[#allocation6 + $0xd0] sm:$0xf]  ;;  %v1854_v21 = vld [vmem:[#allocation6 + $0xd4] sm:$0xf0]  ;;  %v1294_v24 = vor.u32 %v1838_v19, %v1293_v18  ;;  %v1285_v25 = vld [vmem:[#allocation6 + $0x40] sm:$0xf] }
  0x13   :  { %v1421_v22 = vld [vmem:[#allocation6 + $0x150] sm:$0xf]  ;;  %v1870_v23 = vld [vmem:[#allocation6 + $0x154] sm:$0xf0]  ;;  %v1836_v26 = vld [vmem:[#allocation6 + $0x44] sm:$0xf0]  ;;  %v1358_v27 = vor.u32 %v1854_v21, %v1357_v20 }
  0x14   :  { %785 = vmatpush.bf16.msra.mxu0 %v1302_v12  ;;  %vm75_vm0 = vcmask 1040384   ;;  %vm76_vm1 = vcmask 1041409   ;;  %v1422_v28 = vor.u32 %v1870_v23, %v1421_v22  ;;  %v1349_v29 = vld [vmem:[#allocation6 + $0xc0] sm:$0xf]  ;;  %v1501_v30 = vld [vmem:[#allocation6 + $0x1f0] sm:$0xf]  ;;  %v1286_v38 = vor.u32 %v1836_v26, %v1285_v25 }
  0x15   :  { %798 = vmatpush.bf16.msra.mxu1 %v1366_v16  ;;  %v1890_v31 = vld [vmem:[#allocation6 + $0x1f4] sm:$0xf0]  ;;  %v1852_v32 = vld [vmem:[#allocation6 + $0xc4] sm:$0xf0]  ;;  %v1413_v33 = vld [vmem:[#allocation6 + $0x140] sm:$0xf] }
  0x16   :  { %811 = vmatpush.bf16.msra.mxu2 %v1430_v17  ;;  %v1868_v34 = vld [vmem:[#allocation6 + $0x144] sm:$0xf0]  ;;  %v1502_v35 = vor.u32 %v1890_v31, %v1501_v30  ;;  %v1493_v36 = vld [vmem:[#allocation6 + $0x1e0] sm:$0xf]  ;;  %vm2110_vm2 = vmor %vm76_vm1, %vm75_vm0  ;;  %vm78_vm3 = vcmask 1042434   ;;  %v1350_v42 = vor.u32 %v1852_v32, %v1349_v29  ;;  %vm80_vm5 = vcmask 1043459  }
  0x17   :  { %v1277_v39 = vld [vmem:[#allocation6 + $0x30] sm:$0xf]  ;;  %v1834_v40 = vld [vmem:[#allocation6 + $0x34] sm:$0xf0]  ;;  %v1888_v41 = vld [vmem:[#allocation6 + $0x1e4] sm:$0xf0]  ;;  %v1414_v43 = vor.u32 %v1868_v34, %v1413_v33 }
  0x18   :  { %786 = vmatpush.bf16.msra.mxu0 %v1294_v24  ;;  %823 = vmatpush.bf16.msra.mxu3 %v1502_v35  ;;  %v1341_v44 = vld [vmem:[#allocation6 + $0xb0] sm:$0xf]  ;;  %v1850_v45 = vld [vmem:[#allocation6 + $0xb4] sm:$0xf0]  ;;  %v1494_v47 = vor.u32 %v1888_v41, %v1493_v36  ;;  %v1278_v51 = vor.u32 %v1834_v40, %v1277_v39  ;;  %v1269_v52 = vld [vmem:[#allocation6 + $0x20] sm:$0xf] }
  0x19   :  { %799 = vmatpush.bf16.msra.mxu1 %v1358_v27  ;;  %v1405_v46 = vld [vmem:[#allocation6 + $0x130] sm:$0xf]  ;;  %v1866_v48 = vld [vmem:[#allocation6 + $0x134] sm:$0xf0]  ;;  %v1832_v53 = vld [vmem:[#allocation6 + $0x24] sm:$0xf0]  ;;  %v1342_v56 = vor.u32 %v1850_v45, %v1341_v44 }
  0x1a   :  { %812 = vmatpush.bf16.msra.mxu2 %v1422_v28  ;;  %v1485_v49 = vld [vmem:[#allocation6 + $0x1d0] sm:$0xf]  ;;  %v1886_v50 = vld [vmem:[#allocation6 + $0x1d4] sm:$0xf0]  ;;  %vm2117_vm4 = vmor %vm78_vm3, %vm2110_vm2  ;;  %v1406_v57 = vor.u32 %v1866_v48, %v1405_v46  ;;  %v1270_v0 = vor.u32 %v1832_v53, %v1269_v52  ;;  %vm82_vm7 = vcmask 1044484   ;;  %vm84_vm9 = vcmask 1045509  }
  0x1b   :  { %v1486_v54 = vor.u32 %v1886_v50, %v1485_v49  ;;  %v1333_v58 = vld [vmem:[#allocation6 + $0xa0] sm:$0xf]  ;;  %v1884_v60 = vld [vmem:[#allocation6 + $0x1c4] sm:$0xf0]  ;;  %v1261_v1 = vld [vmem:[#allocation6 + $0x10] sm:$0xf] }
  0x1c   :  { %787 = vmatpush.bf16.msra.mxu0 %v1286_v38  ;;  %824 = vmatpush.bf16.msra.mxu3 %v1494_v47  ;;  %v1477_v59 = vld [vmem:[#allocation6 + $0x1c0] sm:$0xf]  ;;  %v1848_v61 = vld [vmem:[#allocation6 + $0xa4] sm:$0xf0]  ;;  %v1830_v2 = vld [vmem:[#allocation6 + $0x14] sm:$0xf0] }
  0x1d   :  { %800 = vmatpush.bf16.msra.mxu1 %v1350_v42  ;;  %v1397_v62 = vld [vmem:[#allocation6 + $0x120] sm:$0xf]  ;;  %v1864_v63 = vld [vmem:[#allocation6 + $0x124] sm:$0xf0]  ;;  %v1478_v3 = vor.u32 %v1884_v60, %v1477_v59  ;;  %vm81_vm6 = vmor %vm80_vm5, %vm2117_vm4  ;;  %v1334_v4 = vor.u32 %v1848_v61, %v1333_v58  ;;  %v1262_v13 = vor.u32 %v1830_v2, %v1261_v1  ;;  %vm86_vm11 = vcmask 38918  }
  0x1e   :  { %813 = vmatpush.bf16.msra.mxu2 %v1414_v43  ;;  %v1398_v5 = vor.u32 %v1864_v63, %v1397_v62  ;;  %v1325_v6 = vld [vmem:[#allocation6 + $0x90] sm:$0xf]  ;;  %v1882_v8 = vld [vmem:[#allocation6 + $0x1b4] sm:$0xf0]  ;;  %vm2124_vm8 = vmor %vm82_vm7, %vm81_vm6  ;;  %v2060_v45 = vmov 0   ;;  %vm1233_vm13 = vcmask 1041408  }
  0x1f   :  { %v1469_v7 = vld [vmem:[#allocation6 + $0x1b0] sm:$0xf]  ;;  %v1846_v9 = vld [vmem:[#allocation6 + $0x94] sm:$0xf0]  ;;  %v1253_v14 = vld [vmem:[#allocation6] sm:$0xf] }
  0x20   :  { %788 = vmatpush.bf16.msra.mxu0 %v1278_v51  ;;  %825 = vmatpush.bf16.msra.mxu3 %v1486_v54  ;;  %v1389_v10 = vld [vmem:[#allocation6 + $0x110] sm:$0xf]  ;;  %v1862_v11 = vld [vmem:[#allocation6 + $0x114] sm:$0xf0]  ;;  %v1828_v15 = vld [vmem:[#allocation6 + $0x4] sm:$0xf0]  ;;  %v1470_v17 = vor.u32 %v1882_v8, %v1469_v7  ;;  %v1326_v18 = vor.u32 %v1846_v9, %v1325_v6 }
  0x21   :  { %801 = vmatpush.bf16.msra.mxu1 %v1342_v56  ;;  %v1317_v16 = vld [vmem:[#allocation6 + $0x80] sm:$0xf]  ;;  %v1390_v19 = vor.u32 %v1862_v11, %v1389_v10  ;;  %v1844_v20 = vld [vmem:[#allocation6 + $0x84] sm:$0xf0]  ;;  %v1565_v25 = vld [vmem:[#allocation6 + $0x270] sm:$0xf]  ;;  %v1254_v29 = vor.u32 %v1828_v15, %v1253_v14 }
  0x22   :  { %814 = vmatpush.bf16.msra.mxu2 %v1406_v57  ;;  %v1461_v21 = vld [vmem:[#allocation6 + $0x1a0] sm:$0xf]  ;;  %v1880_v22 = vld [vmem:[#allocation6 + $0x1a4] sm:$0xf0]  ;;  %v1906_v26 = vld [vmem:[#allocation6 + $0x274] sm:$0xf0]  ;;  %v1318_v34 = vor.u32 %v1844_v20, %v1317_v16 }
  0x23   :  { %v1381_v23 = vld [vmem:[#allocation6 + $0x100] sm:$0xf]  ;;  %v1860_v24 = vld [vmem:[#allocation6 + $0x104] sm:$0xf0]  ;;  %v1629_v27 = vld [vmem:[#allocation6 + $0x2f0] sm:$0xf]  ;;  %v1462_v32 = vor.u32 %v1880_v22, %v1461_v21  ;;  %v1566_v38 = vor.u32 %v1906_v26, %v1565_v25 }
  0x24   :  { %789 = vmatpush.bf16.msra.mxu0 %v1270_v0  ;;  %826 = vmatpush.bf16.msra.mxu3 %v1478_v3  ;;  %v1922_v28 = vld [vmem:[#allocation6 + $0x2f4] sm:$0xf0]  ;;  %v1693_v30 = vld [vmem:[#allocation6 + $0x370] sm:$0xf]  ;;  %vm2131_vm10 = vmor %vm84_vm9, %vm2124_vm8  ;;  %v1382_v35 = vor.u32 %v1860_v24, %v1381_v23  ;;  %73 = vst [vmem:[#allocation2] sm:$0x7f] %v2060_v45 }
  0x25   :  { %802 = vmatpush.bf16.msra.mxu1 %v1334_v4  ;;  %v1938_v31 = vld [vmem:[#allocation6 + $0x374] sm:$0xf0]  ;;  %v1453_v36 = vld [vmem:[#allocation6 + $0x190] sm:$0xf]  ;;  %v1630_v39 = vor.u32 %v1922_v28, %v1629_v27  ;;  %v1557_v40 = vld [vmem:[#allocation6 + $0x260] sm:$0xf] }
  0x26   :  { %815 = vmatpush.bf16.msra.mxu2 %v1398_v5  ;;  %v1878_v37 = vld [vmem:[#allocation6 + $0x194] sm:$0xf0]  ;;  %v1904_v41 = vld [vmem:[#allocation6 + $0x264] sm:$0xf0]  ;;  %v1621_v42 = vld [vmem:[#allocation6 + $0x2e0] sm:$0xf]  ;;  %v1694_v43 = vor.u32 %v1938_v31, %v1693_v30 }
  0x27   :  { %v1920_v44 = vld [vmem:[#allocation6 + $0x2e4] sm:$0xf0]  ;;  %v74_v46 = vld [vmem:[#allocation4] sm:$0x7f]  ;;  %vm87_vm12 = vmor %vm86_vm11, %vm2131_vm10  ;;  %v1454_v49 = vor.u32 %v1878_v37, %v1453_v36  ;;  %v1558_v52 = vor.u32 %v1904_v41, %v1557_v40  ;;  %vm1243_vm14 = vcmask 1024  }
  0x28   :  { %790 = vmatpush.bf16.msra.mxu0 %v1262_v13  ;;  %827 = vmatpush.bf16.msra.mxu3 %v1470_v17  ;;  %v1685_v47 = vld [vmem:[#allocation6 + $0x360] sm:$0xf]  ;;  %v1936_v48 = vld [vmem:[#allocation6 + $0x364] sm:$0xf0]  ;;  %88 = vst.msk [vmem:[#allocation2] sm:$0x7f] %vm87_vm12, %v74_v46  ;;  %v1622_v53 = vor.u32 %v1920_v44, %v1621_v42 }
  0x29   :  { %803 = vmatpush.bf16.msra.mxu1 %v1326_v18  ;;  %v1445_v50 = vld [vmem:[#allocation6 + $0x180] sm:$0xf]  ;;  %v1876_v51 = vld [vmem:[#allocation6 + $0x184] sm:$0xf0]  ;;  %v1549_v54 = vld [vmem:[#allocation6 + $0x250] sm:$0xf]  ;;  %v1686_v57 = vor.u32 %v1936_v48, %v1685_v47 }
  0x2a   :  { %816 = vmatpush.bf16.msra.mxu2 %v1390_v19  ;;  %v1841_v55 = vld [vmem:[#allocation6 + $0x74] sm:$0xf]  ;;  %v1311_v56 = vld [vmem:[#allocation6 + $0x78] sm:$0xf0]  ;;  %v1902_v58 = vld [vmem:[#allocation6 + $0x254] sm:$0xf0]  ;;  %v1446_v63 = vor.u32 %v1876_v51, %v1445_v50 }
  0x2b   :  { %v1613_v59 = vld [vmem:[#allocation6 + $0x2d0] sm:$0xf]  ;;  %v1918_v60 = vld [vmem:[#allocation6 + $0x2d4] sm:$0xf0]  ;;  %v1541_v0 = vld [vmem:[#allocation6 + $0x240] sm:$0xf]  ;;  %v1314_v1 = vor.u32 %v1841_v55, %v1311_v56  ;;  %v1550_v2 = vor.u32 %v1902_v58, %v1549_v54 }
  0x2c   :  { %791 = vmatpush.bf16.msra.mxu0 %v1254_v29  ;;  %828 = vmatpush.bf16.msra.mxu3 %v1462_v32  ;;  %v1677_v61 = vld [vmem:[#allocation6 + $0x350] sm:$0xf]  ;;  %v1934_v62 = vld [vmem:[#allocation6 + $0x354] sm:$0xf0]  ;;  %v1614_v3 = vor.u32 %v1918_v60, %v1613_v59  ;;  %v1900_v4 = vld [vmem:[#allocation6 + $0x244] sm:$0xf0] }
  0x2d   :  { %804 = vmatpush.bf16.msra.mxu1 %v1318_v34  ;;  %v1839_v5 = vld [vmem:[#allocation6 + $0x64] sm:$0xf]  ;;  %v1303_v6 = vld [vmem:[#allocation6 + $0x68] sm:$0xf0]  ;;  %v1678_v7 = vor.u32 %v1934_v62, %v1677_v61  ;;  %v1605_v8 = vld [vmem:[#allocation6 + $0x2c0] sm:$0xf]  ;;  %v1542_v14 = vor.u32 %v1900_v4, %v1541_v0 }
  0x2e   :  { %817 = vmatpush.bf16.msra.mxu2 %v1382_v35  ;;  %v1916_v9 = vld [vmem:[#allocation6 + $0x2c4] sm:$0xf0]  ;;  %v1669_v11 = vld [vmem:[#allocation6 + $0x340] sm:$0xf]  ;;  %v1306_v13 = vor.u32 %v1839_v5, %v1303_v6  ;;  %v1533_v16 = vld [vmem:[#allocation6 + $0x230] sm:$0xf] }
  0x2f   :  { %v89_v10 = vld [vmem:[#allocation2] sm:$0x7f]  ;;  %v1932_v12 = vld [vmem:[#allocation6 + $0x344] sm:$0xf0]  ;;  %v1606_v15 = vor.u32 %v1916_v9, %v1605_v8  ;;  %v1295_v18 = vld [vmem:[#allocation6 + $0x58] sm:$0xf0] }
  0x30   :  { %836 = vmatpush.bf16.msrb.mxu0 %v1566_v38  ;;  %829 = vmatpush.bf16.msra.mxu3 %v1454_v49  ;;  %209 = vst [vmem:[#allocation1] ss:$9 sm:$0xff] %v89_v10  ;;  %v1837_v17 = vld [vmem:[#allocation6 + $0x54] sm:$0xf]  ;;  %v1670_v19 = vor.u32 %v1932_v12, %v1669_v11  ;;  %v1898_v20 = vld [vmem:[#allocation6 + $0x234] sm:$0xf0] }
  0x31   :  { %849 = vmatpush.bf16.msrb.mxu1 %v1630_v39  ;;  %v1597_v21 = vld [vmem:[#allocation6 + $0x2b0] sm:$0xf]  ;;  %v1914_v22 = vld [vmem:[#allocation6 + $0x2b4] sm:$0xf0]  ;;  %v1525_v25 = vld [vmem:[#allocation6 + $0x220] sm:$0xf]  ;;  %v1298_v28 = vor.u32 %v1837_v17, %v1295_v18  ;;  %v1534_v29 = vor.u32 %v1898_v20, %v1533_v16 }
  0x32   :  { %862 = vmatpush.bf16.msrb.mxu2 %v1694_v43  ;;  %v1661_v23 = vld [vmem:[#allocation6 + $0x330] sm:$0xf]  ;;  %v1930_v24 = vld [vmem:[#allocation6 + $0x334] sm:$0xf0]  ;;  %v1896_v26 = vld [vmem:[#allocation6 + $0x224] sm:$0xf0]  ;;  %v1598_v30 = vor.u32 %v1914_v22, %v1597_v21 }
  0x33   :  { %v1589_v27 = vld [vmem:[#allocation6 + $0x2a0] sm:$0xf]  ;;  %v1912_v31 = vld [vmem:[#allocation6 + $0x2a4] sm:$0xf0]  ;;  %v1835_v32 = vld [vmem:[#allocation6 + $0x44] sm:$0xf]  ;;  %v1662_v35 = vor.u32 %v1930_v24, %v1661_v23  ;;  %v1526_v42 = vor.u32 %v1896_v26, %v1525_v25 }
  0x34   :  { %837 = vmatpush.bf16.msrb.mxu0 %v1558_v52  ;;  %830 = vmatpush.bf16.msra.mxu3 %v1446_v63  ;;  %v1287_v33 = vld [vmem:[#allocation6 + $0x48] sm:$0xf0]  ;;  %v1653_v38 = vld [vmem:[#allocation6 + $0x320] sm:$0xf]  ;;  %v1928_v39 = vld [vmem:[#allocation6 + $0x324] sm:$0xf0]  ;;  %v1590_v43 = vor.u32 %v1912_v31, %v1589_v27 }
  0x35   :  { %850 = vmatpush.bf16.msrb.mxu1 %v1622_v53  ;;  %v1290_v41 = vor.u32 %v1835_v32, %v1287_v33  ;;  %v1517_v44 = vld [vmem:[#allocation6 + $0x210] sm:$0xf]  ;;  %v1833_v45 = vld [vmem:[#allocation6 + $0x34] sm:$0xf]  ;;  %v1279_v46 = vld [vmem:[#allocation6 + $0x38] sm:$0xf0]  ;;  %v1654_v47 = vor.u32 %v1928_v39, %v1653_v38 }
  0x36   :  { %863 = vmatpush.bf16.msrb.mxu2 %v1686_v57  ;;  %v1894_v48 = vld [vmem:[#allocation6 + $0x214] sm:$0xf0]  ;;  %v1581_v49 = vld [vmem:[#allocation6 + $0x290] sm:$0xf]  ;;  %v1509_v53 = vld [vmem:[#allocation6 + $0x200] sm:$0xf]  ;;  %v1282_v55 = vor.u32 %v1833_v45, %v1279_v46 }
  0x37   :  { %v2138_v34 = vld [vmem:[#allocation1 + $0x12] sm:$0xff]  ;;  %v2140_v36 = vld [vmem:[#allocation1] sm:$0xff]  ;;  %v2142_v37 = vld [vmem:[#allocation1 + $0x9] sm:$0xff]  ;;  %v1518_v56 = vor.u32 %v1894_v48, %v1517_v44 }
  0x38   :  { %875 = vmatpush.bf16.msrb.mxu3 %v1314_v1  ;;  %838 = vmatpush.bf16.msrb.mxu0 %v1550_v2  ;;  %v2146_v40 = vld [vmem:[#allocation1 + $0x1b] sm:$0xff]  ;;  %v1910_v50 = vld [vmem:[#allocation6 + $0x294] sm:$0xf0]  ;;  %v1645_v51 = vld [vmem:[#allocation6 + $0x310] sm:$0xf] }
  0x39   :  { %851 = vmatpush.bf16.msrb.mxu1 %v1614_v3  ;;  %818 = vmatmul.bf16.vlgmr.msra.gmra.mxu2 %v2138_v34  ;;  %v1926_v52 = vld [vmem:[#allocation6 + $0x314] sm:$0xf0]  ;;  %v1892_v54 = vld [vmem:[#allocation6 + $0x204] sm:$0xf0]  ;;  %v1582_v57 = vor.u32 %v1910_v50, %v1581_v49  ;;  %v1573_v58 = vld [vmem:[#allocation6 + $0x280] sm:$0xf] }
  0x3a   :  { %864 = vmatpush.bf16.msrb.mxu2 %v1678_v7  ;;  %792 = vmatmul.bf16.vlgmr.msra.gmra.mxu0 %v2140_v36  ;;  %v1831_v59 = vld [vmem:[#allocation6 + $0x24] sm:$0xf]  ;;  %v1271_v60 = vld [vmem:[#allocation6 + $0x28] sm:$0xf0]  ;;  %v1646_v61 = vor.u32 %v1926_v52, %v1645_v51  ;;  %v1908_v62 = vld [vmem:[#allocation6 + $0x284] sm:$0xf0]  ;;  %v1510_v8 = vor.u32 %v1892_v54, %v1509_v53 }
  0x3b   :  { %805 = vmatmul.bf16.vlgmr.msra.gmra.mxu1 %v2142_v37  ;;  %831 = vmatmul.bf16.vlgmr.msra.gmra.mxu3 %v2146_v40  ;;  %v1637_v63 = vld [vmem:[#allocation6 + $0x300] sm:$0xf]  ;;  %v1924_v0 = vld [vmem:[#allocation6 + $0x304] sm:$0xf0]  ;;  %v1857_v1 = vld [vmem:[#allocation6 + $0xf4] sm:$0xf]  ;;  %v1274_v5 = vor.u32 %v1831_v59, %v1271_v60  ;;  %v1574_v9 = vor.u32 %v1908_v62, %v1573_v58 }
  0x3c   :  { %876 = vmatpush.bf16.msrb.mxu3 %v1306_v13  ;;  %839 = vmatpush.bf16.msrb.mxu0 %v1542_v14  ;;  %v1375_v2 = vld [vmem:[#allocation6 + $0xf8] sm:$0xf0]  ;;  %v1873_v3 = vld [vmem:[#allocation6 + $0x174] sm:$0xf]  ;;  %v1638_v10 = vor.u32 %v1924_v0, %v1637_v63  ;;  %v1855_v12 = vld [vmem:[#allocation6 + $0xe4] sm:$0xf] }
  0x3d   :  { %852 = vmatpush.bf16.msrb.mxu1 %v1606_v15  ;;  %v1439_v4 = vld [vmem:[#allocation6 + $0x178] sm:$0xf0]  ;;  %v1889_v6 = vld [vmem:[#allocation6 + $0x1f4] sm:$0xf]  ;;  %v1378_v11 = vor.u32 %v1857_v1, %v1375_v2  ;;  %v1367_v16 = vld [vmem:[#allocation6 + $0xe8] sm:$0xf0] }
  0x3e   :  { %865 = vmatpush.bf16.msrb.mxu2 %v1670_v19  ;;  %v1503_v7 = vld [vmem:[#allocation6 + $0x1f8] sm:$0xf0]  ;;  %v1829_v13 = vld [vmem:[#allocation6 + $0x14] sm:$0xf]  ;;  %v1442_v15 = vor.u32 %v1873_v3, %v1439_v4  ;;  %v1871_v17 = vld [vmem:[#allocation6 + $0x164] sm:$0xf]  ;;  %v1370_v27 = vor.u32 %v1855_v12, %v1367_v16 }
  0x3f   :  { %v1263_v14 = vld [vmem:[#allocation6 + $0x18] sm:$0xf0]  ;;  %v1431_v18 = vld [vmem:[#allocation6 + $0x168] sm:$0xf0]  ;;  %v1506_v19 = vor.u32 %v1889_v6, %v1503_v7  ;;  %v1887_v21 = vld [vmem:[#allocation6 + $0x1e4] sm:$0xf] }
  0x40   :  { %877 = vmatpush.bf16.msrb.mxu3 %v1298_v28  ;;  %840 = vmatpush.bf16.msrb.mxu0 %v1534_v29  ;;  %v2150_v20 = vld [vmem:[#allocation1 + $0x36] sm:$0xff]  ;;  %v1495_v22 = vld [vmem:[#allocation6 + $0x1e8] sm:$0xf0]  ;;  %v2154_v24 = vld [vmem:[#allocation1 + $0x2d] sm:$0xff]  ;;  %v1266_v25 = vor.u32 %v1829_v13, %v1263_v14  ;;  %v1434_v31 = vor.u32 %v1871_v17, %v1431_v18 }
  0x41   :  { %853 = vmatpush.bf16.msrb.mxu1 %v1598_v30  ;;  %v2152_v23 = vld [vmem:[#allocation1 + $0x24] sm:$0xff]  ;;  %v1359_v28 = vld [vmem:[#allocation6 + $0xd8] sm:$0xf0]  ;;  %v1827_v29 = vld [vmem:[#allocation6 + $0x4] sm:$0xf]  ;;  %v1498_v38 = vor.u32 %v1887_v21, %v1495_v22 }
  0x42   :  { %866 = vmatpush.bf16.msrb.mxu2 %v1662_v35  ;;  %v1853_v26 = vld [vmem:[#allocation6 + $0xd4] sm:$0xf]  ;;  %v1255_v30 = vld [vmem:[#allocation6 + $0x8] sm:$0xf0]  ;;  %v1567_v35 = vld [vmem:[#allocation6 + $0x278] sm:$0xf0] }
  0x43   :  { %v1869_v32 = vld [vmem:[#allocation6 + $0x154] sm:$0xf]  ;;  %v1423_v39 = vld [vmem:[#allocation6 + $0x158] sm:$0xf0]  ;;  %v1362_v44 = vor.u32 %v1853_v26, %v1359_v28  ;;  %v1851_v45 = vld [vmem:[#allocation6 + $0xc4] sm:$0xf] }
  0x44   :  { %878 = vmatpush.bf16.msrb.mxu3 %v1290_v41  ;;  %841 = vmatpush.bf16.msrb.mxu0 %v1526_v42  ;;  %v1905_v33 = vld [vmem:[#allocation6 + $0x274] sm:$0xf]  ;;  %v1487_v42 = vld [vmem:[#allocation6 + $0x1d8] sm:$0xf0]  ;;  %v1351_v46 = vld [vmem:[#allocation6 + $0xc8] sm:$0xf0]  ;;  %v1426_v48 = vor.u32 %v1869_v32, %v1423_v39 }
  0x45   :  { %854 = vmatpush.bf16.msrb.mxu1 %v1590_v43  ;;  %v1885_v41 = vld [vmem:[#allocation6 + $0x1d4] sm:$0xf]  ;;  %v1258_v43 = vor.u32 %v1827_v29, %v1255_v30  ;;  %v1867_v49 = vld [vmem:[#allocation6 + $0x144] sm:$0xf]  ;;  %v1559_v51 = vld [vmem:[#allocation6 + $0x268] sm:$0xf0] }
  0x46   :  { %867 = vmatpush.bf16.msrb.mxu2 %v1654_v47  ;;  %v1570_v47 = vor.u32 %v1905_v33, %v1567_v35  ;;  %v1903_v50 = vld [vmem:[#allocation6 + $0x264] sm:$0xf]  ;;  %v1490_v52 = vor.u32 %v1885_v41, %v1487_v42  ;;  %v1415_v53 = vld [vmem:[#allocation6 + $0x148] sm:$0xf0]  ;;  %v1343_v58 = vld [vmem:[#allocation6 + $0xb8] sm:$0xf0] }
  0x47   :  { %v1883_v54 = vld [vmem:[#allocation6 + $0x1c4] sm:$0xf]  ;;  %v1562_v59 = vor.u32 %v1903_v50, %v1559_v51  ;;  %v1418_v60 = vor.u32 %v1867_v49, %v1415_v53  ;;  %v1901_v62 = vld [vmem:[#allocation6 + $0x254] sm:$0xf]  ;;  %v1551_v63 = vld [vmem:[#allocation6 + $0x258] sm:$0xf0] }
  0x48   :  { %879 = vmatpush.bf16.msrb.mxu3 %v1282_v55  ;;  %842 = vmatpush.bf16.msrb.mxu0 %v1518_v56  ;;  %v1479_v55 = vld [vmem:[#allocation6 + $0x1c8] sm:$0xf0]  ;;  %v1354_v56 = vor.u32 %v1851_v45, %v1351_v46  ;;  %v1407_v1 = vld [vmem:[#allocation6 + $0x138] sm:$0xf0]  ;;  %v1881_v2 = vld [vmem:[#allocation6 + $0x1b4] sm:$0xf]  ;;  %v1554_v7 = vor.u32 %v1901_v62, %v1551_v63 }
  0x49   :  { %855 = vmatpush.bf16.msrb.mxu1 %v1582_v57  ;;  %v1849_v57 = vld [vmem:[#allocation6 + $0xb4] sm:$0xf]  ;;  %v1482_v0 = vor.u32 %v1883_v54, %v1479_v55  ;;  %v1471_v3 = vld [vmem:[#allocation6 + $0x1b8] sm:$0xf0]  ;;  %v1335_v6 = vld [vmem:[#allocation6 + $0xa8] sm:$0xf0] }
  0x4a   :  { %868 = vmatpush.bf16.msrb.mxu2 %v1646_v61  ;;  %v1865_v61 = vld [vmem:[#allocation6 + $0x134] sm:$0xf]  ;;  %v1346_v4 = vor.u32 %v1849_v57, %v1343_v58  ;;  %v1474_v12 = vor.u32 %v1881_v2, %v1471_v3  ;;  %v1399_v13 = vld [vmem:[#allocation6 + $0x128] sm:$0xf0]  ;;  %v1879_v14 = vld [vmem:[#allocation6 + $0x1a4] sm:$0xf] }
  0x4b   :  { %v1327_v17 = vld [vmem:[#allocation6 + $0x98] sm:$0xf0]  ;;  %v1861_v21 = vld [vmem:[#allocation6 + $0x114] sm:$0xf]  ;;  %v1319_v32 = vld [vmem:[#allocation6 + $0x88] sm:$0xf0] }
  0x4c   :  { %880 = vmatpush.bf16.msrb.mxu3 %v1274_v5  ;;  %843 = vmatpush.bf16.msrb.mxu0 %v1510_v8  ;;  %v1847_v5 = vld [vmem:[#allocation6 + $0xa4] sm:$0xf]  ;;  %v1410_v8 = vor.u32 %v1865_v61, %v1407_v1  ;;  %v1897_v22 = vld [vmem:[#allocation6 + $0x234] sm:$0xf]  ;;  %v1455_v29 = vld [vmem:[#allocation6 + $0x198] sm:$0xf0] }
  0x4d   :  { %856 = vmatpush.bf16.msrb.mxu1 %v1574_v9  ;;  %v1863_v9 = vld [vmem:[#allocation6 + $0x124] sm:$0xf]  ;;  %v1338_v16 = vor.u32 %v1847_v5, %v1335_v6  ;;  %v1877_v28 = vld [vmem:[#allocation6 + $0x194] sm:$0xf]  ;;  %v1383_v39 = vld [vmem:[#allocation6 + $0x108] sm:$0xf0] }
  0x4e   :  { %869 = vmatpush.bf16.msrb.mxu2 %v1638_v10  ;;  %v1899_v10 = vld [vmem:[#allocation6 + $0x244] sm:$0xf]  ;;  %v1527_v42 = vld [vmem:[#allocation6 + $0x228] sm:$0xf0]  ;;  %v1631_v45 = vld [vmem:[#allocation6 + $0x2f8] sm:$0xf0] }
  0x4f   :  { %844 = vmatmul.bf16.vlgmr.msrb.gmra.mxu0 %v2152_v23  ;;  %v1859_v33 = vld [vmem:[#allocation6 + $0x104] sm:$0xf]  ;;  %v1937_v46 = vld [vmem:[#allocation6 + $0x374] sm:$0xf]  ;;  %v1447_v49 = vld [vmem:[#allocation6 + $0x188] sm:$0xf0] }
  0x50   :  { %888 = vmatpush.bf16.msra.mxu0 %v1378_v11  ;;  %857 = vmatmul.bf16.vlgmr.msrb.gmra.mxu1 %v2154_v24  ;;  %v1543_v11 = vld [vmem:[#allocation6 + $0x248] sm:$0xf0]  ;;  %v1895_v41 = vld [vmem:[#allocation6 + $0x224] sm:$0xf]  ;;  %v1893_v54 = vld [vmem:[#allocation6 + $0x214] sm:$0xf] }
  0x51   :  { %901 = vmatpush.bf16.msra.mxu1 %v1442_v15  ;;  %870 = vmatmul.bf16.vlgmr.msrb.gmra.mxu2 %v2150_v20  ;;  %v1463_v15 = vld [vmem:[#allocation6 + $0x1a8] sm:$0xf0]  ;;  %v1546_v18 = vor.u32 %v1899_v10, %v1543_v11  ;;  %v1530_v51 = vor.u32 %v1895_v41, %v1527_v42  ;;  %v1519_v55 = vld [vmem:[#allocation6 + $0x218] sm:$0xf0]  ;;  %v1919_v57 = vld [vmem:[#allocation6 + $0x2e4] sm:$0xf] }
  0x52   :  { %914 = vmatpush.bf16.msra.mxu2 %v1506_v19  ;;  %881 = vmatpush.bf16.msrb.mxu3 %v1266_v25  ;;  %v1402_v19 = vor.u32 %v1863_v9, %v1399_v13  ;;  %v1535_v25 = vld [vmem:[#allocation6 + $0x238] sm:$0xf0]  ;;  %v1466_v26 = vor.u32 %v1879_v14, %v1463_v15  ;;  %v1623_v58 = vld [vmem:[#allocation6 + $0x2e8] sm:$0xf0]  ;;  %v1522_v62 = vor.u32 %v1893_v54, %v1519_v55  ;;  %v1891_v63 = vld [vmem:[#allocation6 + $0x204] sm:$0xf] }
  0x53   :  { %v1538_v35 = vor.u32 %v1897_v22, %v1535_v25  ;;  %v1687_v61 = vld [vmem:[#allocation6 + $0x368] sm:$0xf0]  ;;  %v1757_v2 = vld [vmem:[#allocation8 + $0x70] sm:$0xf]  ;;  %v1954_v3 = vld [vmem:[#allocation8 + $0x74] sm:$0xf0] }
  0x54   :  { %889 = vmatpush.bf16.msra.mxu0 %v1370_v27  ;;  %v1391_v27 = vld [vmem:[#allocation6 + $0x118] sm:$0xf0]  ;;  %v1511_v1 = vld [vmem:[#allocation6 + $0x208] sm:$0xf0]  ;;  %v1917_v5 = vld [vmem:[#allocation6 + $0x2d4] sm:$0xf] }
  0x55   :  { %902 = vmatpush.bf16.msra.mxu1 %v1434_v31  ;;  %v1843_v31 = vld [vmem:[#allocation6 + $0x84] sm:$0xf]  ;;  %v1615_v6 = vld [vmem:[#allocation6 + $0x2d8] sm:$0xf0]  ;;  %v1514_v10 = vor.u32 %v1891_v63, %v1511_v1  ;;  %v1607_v14 = vld [vmem:[#allocation6 + $0x2c8] sm:$0xf0] }
  0x56   :  { %915 = vmatpush.bf16.msra.mxu2 %v1498_v38  ;;  %882 = vmatpush.bf16.msrb.mxu3 %v1258_v43  ;;  %v1394_v38 = vor.u32 %v1861_v21, %v1391_v27  ;;  %v1458_v43 = vor.u32 %v1877_v28, %v1455_v29  ;;  %v1322_v50 = vor.u32 %v1843_v31, %v1319_v32  ;;  %v1679_v9 = vld [vmem:[#allocation6 + $0x358] sm:$0xf0]  ;;  %v1915_v13 = vld [vmem:[#allocation6 + $0x2c4] sm:$0xf]  ;;  %v1591_v25 = vld [vmem:[#allocation6 + $0x2a8] sm:$0xf0] }
  0x57   :  { %v1618_v11 = vor.u32 %v1917_v5, %v1615_v6  ;;  %v1931_v15 = vld [vmem:[#allocation6 + $0x344] sm:$0xf]  ;;  %v1655_v27 = vld [vmem:[#allocation6 + $0x328] sm:$0xf0]  ;;  %v1583_v31 = vld [vmem:[#allocation6 + $0x298] sm:$0xf0] }
  0x58   :  { %890 = vmatpush.bf16.msra.mxu0 %v1362_v44  ;;  %v1921_v44 = vld [vmem:[#allocation6 + $0x2f4] sm:$0xf]  ;;  %v1911_v22 = vld [vmem:[#allocation6 + $0x2a4] sm:$0xf]  ;;  %v1639_v42 = vld [vmem:[#allocation6 + $0x308] sm:$0xf0] }
  0x59   :  { %903 = vmatpush.bf16.msra.mxu1 %v1426_v48  ;;  %883 = vmatmul.bf16.vlgmr.msrb.gmra.mxu3 %v2140_v36  ;;  %v1845_v36 = vld [vmem:[#allocation6 + $0x94] sm:$0xf]  ;;  %v1875_v48 = vld [vmem:[#allocation6 + $0x184] sm:$0xf]  ;;  %v1634_v53 = vor.u32 %v1921_v44, %v1631_v45  ;;  %v1594_v28 = vor.u32 %v1911_v22, %v1591_v25  ;;  %v1759_v44 = vld [vmem:[#allocation8 + $0x78] sm:$0xf0] }
  0x5a   :  { %927 = vmatpush.bf16.msra.mxu3 %v1570_v47  ;;  %916 = vmatpush.bf16.msra.mxu2 %v1490_v52  ;;  %v1330_v30 = vor.u32 %v1845_v36, %v1327_v17  ;;  %v1695_v47 = vld [vmem:[#allocation6 + $0x378] sm:$0xf0]  ;;  %v1386_v52 = vor.u32 %v1859_v33, %v1383_v39  ;;  %v1913_v17 = vld [vmem:[#allocation6 + $0x2b4] sm:$0xf]  ;;  %v1575_v39 = vld [vmem:[#allocation6 + $0x288] sm:$0xf0] }
  0x5b   :  { %v1925_v32 = vld [vmem:[#allocation6 + $0x314] sm:$0xf]  ;;  %v1647_v33 = vld [vmem:[#allocation6 + $0x318] sm:$0xf0]  ;;  %v1923_v41 = vld [vmem:[#allocation6 + $0x304] sm:$0xf] }
  0x5c   :  { %891 = vmatpush.bf16.msra.mxu0 %v1354_v56  ;;  %v1698_v56 = vor.u32 %v1937_v46, %v1695_v47  ;;  %v1642_v46 = vor.u32 %v1923_v41, %v1639_v42  ;;  %v1741_v54 = vld [vmem:[#allocation8 + $0x50] sm:$0xf]  ;;  %v1950_v55 = vld [vmem:[#allocation8 + $0x54] sm:$0xf0]  ;;  %v1717_v6 = vld [vmem:[#allocation8 + $0x20] sm:$0xf] }
  0x5d   :  { %904 = vmatpush.bf16.msra.mxu1 %v1418_v60  ;;  %v1935_v60 = vld [vmem:[#allocation6 + $0x364] sm:$0xf]  ;;  %v1946_v1 = vld [vmem:[#allocation8 + $0x34] sm:$0xf0]  ;;  %v1821_v41 = vld [vmem:[#allocation8 + $0xf0] sm:$0xf] }
  0x5e   :  { %928 = vmatpush.bf16.msra.mxu3 %v1562_v59  ;;  %917 = vmatpush.bf16.msra.mxu2 %v1482_v0  ;;  %v1450_v59 = vor.u32 %v1875_v48, %v1447_v49  ;;  %v1626_v0 = vor.u32 %v1919_v57, %v1623_v58  ;;  %v1749_v48 = vld [vmem:[#allocation8 + $0x60] sm:$0xf]  ;;  %v1952_v49 = vld [vmem:[#allocation8 + $0x64] sm:$0xf0]  ;;  %v1742_v57 = vor.u32 %v1950_v55, %v1741_v54  ;;  %v1743_v58 = vld [vmem:[#allocation8 + $0x58] sm:$0xf0] }
  0x5f   :  { %v1970_v42 = vld [vmem:[#allocation8 + $0xf4] sm:$0xf0] }
  0x60   :  { %892 = vmatpush.bf16.msra.mxu0 %v1346_v4  ;;  %v1690_v4 = vor.u32 %v1935_v60, %v1687_v61  ;;  %v1733_v60 = vld [vmem:[#allocation8 + $0x40] sm:$0xf]  ;;  %v1948_v61 = vld [vmem:[#allocation8 + $0x44] sm:$0xf0] }
  0x61   :  { %905 = vmatpush.bf16.msra.mxu1 %v1410_v8  ;;  %v1933_v8 = vld [vmem:[#allocation6 + $0x354] sm:$0xf] }
  0x62   :  { %929 = vmatpush.bf16.msra.mxu3 %v1554_v7  ;;  %918 = vmatpush.bf16.msra.mxu2 %v1474_v12  ;;  %v1758_v7 = vor.u32 %v1954_v3, %v1757_v2  ;;  %v1682_v12 = vor.u32 %v1933_v8, %v1679_v9  ;;  %v1945_v2 = vld [vmem:[#allocation8 + $0x34] sm:$0xf]  ;;  %v1943_v8 = vld [vmem:[#allocation8 + $0x24] sm:$0xf] }
  0x64   :  { %893 = vmatpush.bf16.msra.mxu0 %v1338_v16  ;;  %v1671_v16 = vld [vmem:[#allocation6 + $0x348] sm:$0xf0] }
  0x65   :  { %906 = vmatpush.bf16.msra.mxu1 %v1402_v19  ;;  %v1674_v36 = vor.u32 %v1931_v15, %v1671_v16  ;;  %v1663_v19 = vld [vmem:[#allocation6 + $0x338] sm:$0xf0] }
  0x66   :  { %930 = vmatpush.bf16.msra.mxu3 %v1546_v18  ;;  %919 = vmatpush.bf16.msra.mxu2 %v1466_v26  ;;  %v1599_v18 = vld [vmem:[#allocation6 + $0x2b8] sm:$0xf0]  ;;  %v1927_v26 = vld [vmem:[#allocation6 + $0x324] sm:$0xf] }
  0x67   :  { %v1658_v29 = vor.u32 %v1927_v26, %v1655_v27  ;;  %v1711_v16 = vld [vmem:[#allocation8 + $0x18] sm:$0xf0] }
  0x68   :  { %894 = vmatpush.bf16.msra.mxu0 %v1330_v30  ;;  %v1909_v30 = vld [vmem:[#allocation6 + $0x294] sm:$0xf] }
  0x69   :  { %907 = vmatpush.bf16.msra.mxu1 %v1394_v38  ;;  %v1907_v38 = vld [vmem:[#allocation6 + $0x284] sm:$0xf] }
  0x6a   :  { %931 = vmatpush.bf16.msra.mxu3 %v1538_v35  ;;  %920 = vmatpush.bf16.msra.mxu2 %v1458_v43  ;;  %v1650_v35 = vor.u32 %v1925_v32, %v1647_v33  ;;  %v1953_v43 = vld [vmem:[#allocation8 + $0x74] sm:$0xf]  ;;  %v1578_v45 = vor.u32 %v1907_v38, %v1575_v39 }
  0x6b   :  { %v1762_v47 = vor.u32 %v1953_v43, %v1759_v44  ;;  %v1969_v43 = vld [vmem:[#allocation8 + $0xf4] sm:$0xf] }
  0x6c   :  { %895 = vmatpush.bf16.msra.mxu0 %v1322_v50  ;;  %v1951_v50 = vld [vmem:[#allocation8 + $0x64] sm:$0xf] }
  0x6d   :  { %908 = vmatpush.bf16.msra.mxu1 %v1386_v52  ;;  %v1751_v52 = vld [vmem:[#allocation8 + $0x68] sm:$0xf0] }
  0x6e   :  { %932 = vmatpush.bf16.msra.mxu3 %v1530_v51  ;;  %921 = vmatpush.bf16.msra.mxu2 %v1450_v59  ;;  %v1750_v51 = vor.u32 %v1952_v49, %v1749_v48  ;;  %v1813_v48 = vld [vmem:[#allocation8 + $0xe0] sm:$0xf]  ;;  %v1968_v49 = vld [vmem:[#allocation8 + $0xe4] sm:$0xf0] }
  0x6f   :  { %896 = vmatmul.bf16.vlgmr.msra.gmra.mxu0 %v2142_v37  ;;  %v1610_v37 = vor.u32 %v1915_v13, %v1607_v14  ;;  %v1942_v13 = vld [vmem:[#allocation8 + $0x14] sm:$0xf0]  ;;  %v1941_v14 = vld [vmem:[#allocation8 + $0x14] sm:$0xf] }
  0x70   :  { %940 = vmatpush.bf16.msrb.mxu0 %v1634_v53  ;;  %909 = vmatmul.bf16.vlgmr.msra.gmra.mxu1 %v2138_v34  ;;  %v1929_v34 = vld [vmem:[#allocation6 + $0x334] sm:$0xf]  ;;  %v1754_v53 = vor.u32 %v1951_v50, %v1751_v52  ;;  %v1815_v52 = vld [vmem:[#allocation8 + $0xe8] sm:$0xf0] }
  0x71   :  { %953 = vmatpush.bf16.msrb.mxu1 %v1698_v56  ;;  %922 = vmatmul.bf16.vlgmr.msra.gmra.mxu2 %v2146_v40  ;;  %v1602_v40 = vor.u32 %v1913_v17, %v1599_v18  ;;  %v1666_v21 = vor.u32 %v1929_v34, %v1663_v19  ;;  %v1949_v56 = vld [vmem:[#allocation8 + $0x54] sm:$0xf]  ;;  %v1940_v17 = vld [vmem:[#allocation8 + $0x4] sm:$0xf0]  ;;  %v1939_v18 = vld [vmem:[#allocation8 + $0x4] sm:$0xf] }
  0x72   :  { %933 = vmatpush.bf16.msra.mxu3 %v1522_v62  ;;  %1168 = vmatpush.bf16.msrb.mxu2 %v1758_v7  ;;  %v1746_v59 = vor.u32 %v1949_v56, %v1743_v58  ;;  %v1735_v62 = vld [vmem:[#allocation8 + $0x48] sm:$0xf0]  ;;  %v1944_v7 = vld [vmem:[#allocation8 + $0x24] sm:$0xf0]  ;;  %v1805_v56 = vld [vmem:[#allocation8 + $0xd0] sm:$0xf] }
  0x73   :  { %v1718_v9 = vor.u32 %v1944_v7, %v1717_v6  ;;  %v1703_v19 = vld [vmem:[#allocation8 + $0x8] sm:$0xf0]  ;;  %v1965_v58 = vld [vmem:[#allocation8 + $0xd4] sm:$0xf]  ;;  %v1789_v7 = vld [vmem:[#allocation8 + $0xb0] sm:$0xf] }
  0x74   :  { %941 = vmatpush.bf16.msrb.mxu0 %v1626_v0  ;;  %v1725_v0 = vld [vmem:[#allocation8 + $0x30] sm:$0xf]  ;;  %v1799_v6 = vld [vmem:[#allocation8 + $0xc8] sm:$0xf0] }
  0x75   :  { %954 = vmatpush.bf16.msrb.mxu1 %v1690_v4  ;;  %v1726_v3 = vor.u32 %v1946_v1, %v1725_v0  ;;  %v1727_v4 = vld [vmem:[#allocation8 + $0x38] sm:$0xf0] }
  0x76   :  { %934 = vmatpush.bf16.msra.mxu3 %v1514_v10  ;;  %1169 = vmatpush.bf16.msrb.mxu2 %v1750_v51  ;;  %v1730_v5 = vor.u32 %v1945_v2, %v1727_v4  ;;  %v1719_v10 = vld [vmem:[#allocation8 + $0x28] sm:$0xf0]  ;;  %v1967_v51 = vld [vmem:[#allocation8 + $0xe4] sm:$0xf]  ;;  %v1797_v2 = vld [vmem:[#allocation8 + $0xc0] sm:$0xf] }
  0x77   :  { %v1818_v55 = vor.u32 %v1967_v51, %v1815_v52  ;;  %v1963_v4 = vld [vmem:[#allocation8 + $0xc4] sm:$0xf] }
  0x78   :  { %942 = vmatpush.bf16.msrb.mxu0 %v1618_v11  ;;  %v1722_v11 = vor.u32 %v1943_v8, %v1719_v10  ;;  %v1962_v8 = vld [vmem:[#allocation8 + $0xb4] sm:$0xf0]  ;;  %v1802_v10 = vor.u32 %v1963_v4, %v1799_v6 }
  0x79   :  { %955 = vmatpush.bf16.msrb.mxu1 %v1682_v12  ;;  %935 = vmatmul.bf16.vlgmr.msra.gmra.mxu3 %v2152_v23  ;;  %v1586_v23 = vor.u32 %v1909_v30, %v1583_v31  ;;  %v1709_v12 = vld [vmem:[#allocation8 + $0x10] sm:$0xf] }
  0x7a   :  { %1170 = vmatpush.bf16.msrb.mxu2 %v1742_v57  ;;  %v1710_v15 = vor.u32 %v1942_v13, %v1709_v12  ;;  %v1966_v57 = vld [vmem:[#allocation8 + $0xd4] sm:$0xf0]  ;;  %v1791_v12 = vld [vmem:[#allocation8 + $0xb8] sm:$0xf0] }
  0x7c   :  { %943 = vmatpush.bf16.msrb.mxu0 %v1610_v37  ;;  %v1714_v37 = vor.u32 %v1941_v14, %v1711_v16  ;;  %v1790_v14 = vor.u32 %v1962_v8, %v1789_v7  ;;  %v1781_v16 = vld [vmem:[#allocation8 + $0xa0] sm:$0xf] }
  0x7d   :  { %956 = vmatpush.bf16.msrb.mxu1 %v1674_v36  ;;  %v1701_v36 = vld [vmem:[#allocation8] sm:$0xf] }
  0x7e   :  { %v1702_v34 = vor.u32 %v1940_v17, %v1701_v36  ;;  %v1959_v36 = vld [vmem:[#allocation8 + $0xa4] sm:$0xf] }
  0x80   :  { %944 = vmatpush.bf16.msrb.mxu0 %v1602_v40  ;;  %v2169_v40 = vld [vmem:[%s2187_s2] sm:$0x3] }
  0x81   :  { %957 = vmatpush.bf16.msrb.mxu1 %v1666_v21  ;;  %v1706_v21 = vor.u32 %v1939_v18, %v1703_v19  ;;  %v204_v22 = vperm.slane %v2169_v40, 0  ;;  %v1783_v18 = vld [vmem:[#allocation8 + $0xa8] sm:$0xf0] }
  0x84   :  { %945 = vmatpush.bf16.msrb.mxu0 %v1594_v28 }
  0x85   :  { %958 = vmatpush.bf16.msrb.mxu1 %v1658_v29 }
  0x88   :  { %946 = vmatpush.bf16.msrb.mxu0 %v1586_v23 }
  0x89   :  { %959 = vmatpush.bf16.msrb.mxu1 %v1650_v35 }
  0x8c   :  { %947 = vmatpush.bf16.msrb.mxu0 %v1578_v45 }
  0x8d   :  { %960 = vmatpush.bf16.msrb.mxu1 %v1642_v46  ;;  %v1822_v46 = vor.u32 %v1970_v42, %v1821_v41 }
  0x8f   :  { %948 = vmatmul.bf16.vlgmr.msrb.gmra.mxu0 %v2154_v24  ;;  %v1947_v24 = vld [vmem:[#allocation8 + $0x44] sm:$0xf]  ;;  %1181 = vmatpush.bf16.msrb.mxu3 %v1822_v46 }
  0x90   :  { %1194 = vmatpush.bf16.msra.mxu0 %v1762_v47  ;;  %961 = vmatmul.bf16.vlgmr.msrb.gmra.mxu1 %v2150_v20  ;;  %v1734_v20 = vor.u32 %v1948_v61, %v1733_v60  ;;  %v1738_v63 = vor.u32 %v1947_v24, %v1735_v62  ;;  %v1823_v47 = vld [vmem:[#allocation8 + $0xf8] sm:$0xf0]  ;;  %v1806_v60 = vor.u32 %v1966_v57, %v1805_v56 }
  0x91   :  { %v1826_v50 = vor.u32 %v1969_v43, %v1823_v47  ;;  %v1807_v61 = vld [vmem:[#allocation8 + $0xd8] sm:$0xf0] }
  0x92   :  { %1171 = vmatpush.bf16.msrb.mxu2 %v1734_v20 }
  0x93   :  { %1207 = vmatpush.bf16.msra.mxu1 %v1826_v50 }
  0x94   :  { %1195 = vmatpush.bf16.msra.mxu0 %v1754_v53  ;;  %v1814_v53 = vor.u32 %v1968_v49, %v1813_v48 }
  0x96   :  { %1172 = vmatpush.bf16.msrb.mxu2 %v1726_v3  ;;  %1182 = vmatpush.bf16.msrb.mxu3 %v1814_v53  ;;  %v1964_v3 = vld [vmem:[#allocation8 + $0xc4] sm:$0xf0] }
  0x97   :  { %1208 = vmatpush.bf16.msra.mxu1 %v1818_v55 }
  0x98   :  { %1196 = vmatpush.bf16.msra.mxu0 %v1746_v59 }
  0x9a   :  { %1173 = vmatpush.bf16.msrb.mxu2 %v1718_v9  ;;  %1183 = vmatpush.bf16.msrb.mxu3 %v1806_v60 }
  0x9c   :  { %1197 = vmatpush.bf16.msra.mxu0 %v1738_v63  ;;  %v1810_v63 = vor.u32 %v1965_v58, %v1807_v61 }
  0x9e   :  { %1174 = vmatpush.bf16.msrb.mxu2 %v1710_v15  ;;  %1209 = vmatpush.bf16.msra.mxu1 %v1810_v63 }
  0xa0   :  { %1198 = vmatpush.bf16.msra.mxu0 %v1730_v5  ;;  %v1798_v5 = vor.u32 %v1964_v3, %v1797_v2 }
  0xa2   :  { %1175 = vmatpush.bf16.msrb.mxu2 %v1702_v34  ;;  %1184 = vmatpush.bf16.msrb.mxu3 %v1798_v5  ;;  %v1786_v34 = vor.u32 %v1959_v36, %v1783_v18 }
  0xa3   :  { %1210 = vmatpush.bf16.msra.mxu1 %v1802_v10 }
  0xa4   :  { %1199 = vmatpush.bf16.msra.mxu0 %v1722_v11  ;;  %v1961_v11 = vld [vmem:[#allocation8 + $0xb4] sm:$0xf] }
  0xa5   :  { %v1794_v15 = vor.u32 %v1961_v11, %v1791_v12 }
  0xa6   :  { %1185 = vmatpush.bf16.msrb.mxu3 %v1790_v14 }
  0xa7   :  { %1211 = vmatpush.bf16.msra.mxu1 %v1794_v15 }
  0xa8   :  { %1200 = vmatpush.bf16.msra.mxu0 %v1714_v37  ;;  %v1960_v37 = vld [vmem:[#allocation8 + $0xa4] sm:$0xf0] }
  0xa9   :  { %v1782_v17 = vor.u32 %v1960_v37, %v1781_v16 }
  0xab   :  { %1186 = vmatpush.bf16.msrb.mxu3 %v1782_v17  ;;  %1212 = vmatpush.bf16.msra.mxu1 %v1786_v34  ;;  %v1240_v34 = vstv %s2191_s6 }
  0xac   :  { %1201 = vmatpush.bf16.msra.mxu0 %v1706_v21  ;;  %v1773_v21 = vld [vmem:[#allocation8 + $0x90] sm:$0xf] }
  0xb7   :  { %v793_v25 = vpop.f32.mrf.mxu0 }
  0xb8   :  { %v806_v26 = vpop.f32.mrf.mxu1  ;;  %v794_v27 = vadd.f32 %v793_v25, %v204_v22  ;;  %v1958_v22 = vld [vmem:[#allocation8 + $0x94] sm:$0xf0]  ;;  %v1957_v25 = vld [vmem:[#allocation8 + $0x94] sm:$0xf] }
  0xba   :  { %v807_v28 = vadd.f32 %v806_v26, %v794_v27  ;;  %v1774_v26 = vor.u32 %v1958_v22, %v1773_v21  ;;  %v1775_v27 = vld [vmem:[#allocation8 + $0x98] sm:$0xf0] }
  0xbc   :  { %v819_v29 = vpop.f32.mrf.mxu2  ;;  %1187 = vmatpush.bf16.msrb.mxu3 %v1774_v26 }
  0xbd   :  { %v820_v32 = vadd.f32 %v819_v29, %v807_v28  ;;  %v1778_v28 = vor.u32 %v1957_v25, %v1775_v27 }
  0xbe   :  { %v832_v33 = vpop.f32.mrf.mxu3 }
  0xbf   :  { %v795_v30 = vpop.f32.mrf.mxu0  ;;  %v833_v35 = vadd.f32 %v832_v33, %v820_v32  ;;  %1213 = vmatpush.bf16.msra.mxu1 %v1778_v28  ;;  %v1956_v32 = vld [vmem:[#allocation8 + $0x84] sm:$0xf0]  ;;  %v1955_v33 = vld [vmem:[#allocation8 + $0x84] sm:$0xf] }
  0xc0   :  { %v808_v31 = vpop.f32.mrf.mxu1 }
  0xc1   :  { %v1765_v31 = vld [vmem:[#allocation8 + $0x80] sm:$0xf] }
  0xc4   :  { %v821_v23 = vpop.f32.mrf.mxu2 }
  0xc5   :  { %v1766_v23 = vor.u32 %v1956_v32, %v1765_v31 }
  0xc6   :  { %v834_v45 = vpop.f32.mrf.mxu3 }
  0xc7   :  { %1188 = vmatpush.bf16.msrb.mxu3 %v1766_v23 }
  0xcc   :  { %v845_v38 = vpop.f32.mrf.mxu0 }
  0xcd   :  { %v858_v39 = vpop.f32.mrf.mxu1  ;;  %v846_v44 = vadd.f32 %v845_v38, %v833_v35  ;;  %v1767_v35 = vld [vmem:[#allocation8 + $0x88] sm:$0xf0] }
  0xce   :  { %v1770_v38 = vor.u32 %v1955_v33, %v1767_v35 }
  0xcf   :  { %v859_v54 = vadd.f32 %v858_v39, %v846_v44  ;;  %v205_v39 = vperm.slane %v2169_v40, 1 }
  0xd0   :  { %1214 = vmatpush.bf16.msra.mxu1 %v1770_v38 }
  0xd4   :  { %v871_v59 = vpop.f32.mrf.mxu2  ;;  %v847_v20 = vpop.f32.mrf.mxu0 }
  0xd5   :  { %v872_v24 = vadd.f32 %v871_v59, %v859_v54  ;;  %v860_v62 = vpop.f32.mrf.mxu1  ;;  %v1002_v20 = vld [vmem:[%s2189_s4] sm:$0x3] }
  0xd6   :  { %v1222_v62 = vld [vmem:[%s2190_s5] sm:$0x3]  ;;  %v1005_v63 = vperm.slane %v1002_v20, 1  ;;  %v1004_v3 = vperm.slane %v1002_v20, 0 }
  0xd7   :  { %v966_v0 = vmax.f32 %v872_v24, 0.0 }
  0xd9   :  { %v968_v1 = vpack.c.bf16 %v966_v0, %v966_v0  ;;  %v1223_v0 = vunpack.c.l.bf16 %v1222_v62 }
  0xdb   :  { %1176 = vmatmul.bf16.vlgmr.msrb.gmra.mxu2 %v968_v1  ;;  %1202 = vmatmul.bf16.vlgmr.msra.gmra.mxu0 %v968_v1  ;;  %v1226_v5 = vperm.slane %v1223_v0, 2  ;;  %v1225_v6 = vperm.slane %v1223_v0, 0 }
  0xdc   :  { %v884_v9 = vpop.f32.mrf.mxu3  ;;  %v873_v13 = vpop.f32.mrf.mxu2 }
  0xdd   :  { %v885_v44 = vadd.f32 %v884_v9, %v205_v39  ;;  %v1230_v9 = vperm.slane %v1226_v5, 0  ;;  %v1229_v12 = vperm.slane %v1225_v6, 0 }
  0xe4   :  { %v886_v19 = vpop.f32.mrf.mxu3 }
  0xec   :  { %v897_v29 = vpop.f32.mrf.mxu0 }
  0xed   :  { %v910_v30 = vpop.f32.mrf.mxu1  ;;  %v898_v46 = vadd.f32 %v897_v29, %v885_v44 }
  0xef   :  { %v911_v48 = vadd.f32 %v910_v30, %v898_v46 }
  0xf4   :  { %v899_v41 = vpop.f32.mrf.mxu0  ;;  %v923_v42 = vpop.f32.mrf.mxu2 }
  0xf5   :  { %v912_v43 = vpop.f32.mrf.mxu1  ;;  %v924_v50 = vadd.f32 %v923_v42, %v911_v48 }
  0xfc   :  { %v936_v45 = vpop.f32.mrf.mxu3  ;;  %v925_v47 = vpop.f32.mrf.mxu2 }
  0xfd   :  { %v937_v51 = vadd.f32 %v936_v45, %v924_v50 }
 0x104   :  { %v938_v49 = vpop.f32.mrf.mxu3 }
 0x10c   :  { %v949_v52 = vpop.f32.mrf.mxu0 }
 0x10d   :  { %v950_v53 = vadd.f32 %v949_v52, %v937_v51  ;;  %v962_v54 = vpop.f32.mrf.mxu1 }
 0x10f   :  { %v963_v55 = vadd.f32 %v962_v54, %v950_v53 }
 0x111   :  { %v967_v56 = vmax.f32 %v963_v55, 0.0 }
 0x113   :  { %v969_v57 = vpack.c.bf16 %v967_v56, %v967_v56 }
 0x114   :  { %v951_v58 = vpop.f32.mrf.mxu0 }
 0x115   :  { %v964_v59 = vpop.f32.mrf.mxu1  ;;  %1189 = vmatmul.bf16.vlgmr.msrb.gmra.mxu3 %v969_v57  ;;  %1215 = vmatmul.bf16.vlgmr.msra.gmra.mxu1 %v969_v57 }
 0x158   :  { %v1203_v40 = vpop.f32.mrf.mxu0 }
 0x159   :  { %v1204_v1 = vadd.f32 %v1203_v40, %v1005_v63 }
 0x15e   :  { %v1177_v60 = vpop.f32.mrf.mxu2 }
 0x15f   :  { %v1178_v7 = vadd.f32 %v1177_v60, %v1004_v3 }
 0x160   :  { %v1205_v61 = vpop.f32.mrf.mxu0 }
 0x166   :  { %v1179_v24 = vpop.f32.mrf.mxu2 }
 0x192   :  { %v1216_v2 = vpop.f32.mrf.mxu1 }
 0x193   :  { %v1217_v4 = vadd.f32 %v1216_v2, %v1204_v1 }
 0x195   :  { %v1221_v8 = vmax.f32 %v1217_v4, 0.0 }
 0x197   :  { %v1232_v15 = vmul.f32 %v1230_v9, %v1221_v8 }
 0x198   :  { %v1190_v10 = vpop.f32.mrf.mxu3 }
 0x199   :  { %v1191_v11 = vadd.f32 %v1190_v10, %v1178_v7  ;;  %v1235_v36 = vsel %vm1233_vm13, %v1232_v15, 0.0 }
 0x19a   :  { %v1218_v13 = vpop.f32.mrf.mxu1 }
 0x19b   :  { %v1220_v14 = vmax.f32 %v1191_v11, 0.0 }
 0x19d   :  { %v1231_v16 = vmul.f32 %v1229_v12, %v1220_v14 }
 0x19f   :  { %v1234_v37 = vsel %vm1233_vm13, %v1231_v16, 0.0 }
 0x1a0   :  { %v1192_v17 = vpop.f32.mrf.mxu3  ;;  %v1236_v18 = vadd.f32 %v1235_v36, %v1234_v37 }
 0x1a2   :  { %1237 = vadd.xlane.f32.xlu0 %v1236_v18 }
 0x215   :  { %v1238_v19 = vpop.xlane.xlu0 %1237 }
 0x216   :  { %v1241_v21 = vadd.f32 %v1240_v34, %v1238_v19 }
 0x218   :  { %1977 = vtanh.f32 %v1241_v21 }
 0x21e   :  { %v1978_v22 = vpop.eup %1977 }
 0x21f   :  { %1244 = vst.msk [vmem:[%s2192_s7] sm:$0x3] %vm1243_vm14, %v1978_v22 }
 0x220   :  { %1249 = vsyncpa [#allocation5], 1 }
 0x221   :  { %1250 = vsyncpa [#allocation7], 1 }

</bundles_post_ra>
